<compile_context>
chip_gen: v7x
topology: tpu7x:2x2x1
jax: 0.10.0
libtpu: 0.0.40
codegen_flags: <defaults>
</compile_context>

<pallas_src>
import jax
import jax.numpy as jnp
from jax.experimental import pallas as pl
from jax.experimental.pallas import tpu as pltpu


def _sigmoid(v):
    # Exact f32 logistic (exp on the EUP).  pl.reciprocal(approx=True) was
    # considered but rejected: its error budget is too close to the 1e-3 check.
    return 1.0 / (1.0 + jnp.exp(-v))


# --------------------------- fused AttnBlock kernel ---------------------------
#
# Column ("group") layout, everything lane-tile aligned for C % 32 == 0 (f32):
#   width 4C : group p = ho*2 + wo         (spatial position of space conv)
#   width 8C : group q = p*2 + do          (spatial position, time frame)
# The wrapper permutes (ho, wo, do) -> (do, ho, wo) when reshaping to NCDHW.
def _attn_fused_kernel(x_ref, w1_ref, avg4_ref, w2_ref, wf_ref, rows_ref, o_ref):
    n, c = x_ref.shape
    c4, c8 = 4 * c, 8 * c
    f32 = jnp.float32

    x = x_ref[...]                                   # (N, C)

    # Packed per-channel row vectors (one DMA):  rows = [space_b, gamma, beta,
    # time_b, final_b], each tiled 8x along lanes; slice the width we need.
    bs4    = rows_ref[0:1, :c4]                      # (1, 4C)
    gamma4 = rows_ref[1:2, :c4]                      # (1, 4C)
    beta4  = rows_ref[2:3, :c4]                      # (1, 4C)
    bt8    = rows_ref[3:4, :]                        # (1, 8C)
    bf8    = rows_ref[4:5, :]                        # (1, 8C)

    # ---- space conv (all 4 taps) + x lane-replication : ONE MXU matmul ----
    # w1 = [ws_tap(p=0..3) | I I I I]  -> yx[:, :4C] = conv taps, yx[:, 4C:] = x tiled.
    yx = jnp.dot(x, w1_ref[...], preferred_element_type=f32)      # (N, 8C)
    ys_all = yx[:, :c4] + bs4                        # (N, 4C): space-conv outputs
    x4     = yx[:, c4:]                              # (N, 4C): x per spatial position

    # ---- BatchNorm3d biased batch stats over the 4*N positions per channel ----
    # avg4 = kron(ones(4,4), I_C): group-sum + broadcast back, done on the MXU
    # (keeps the cross-lane work off the XLU and needs no unaligned slicing).
    inv_cnt = 1.0 / (4 * n)
    colsum = jnp.sum(ys_all, axis=0, keepdims=True)                # (1, 4C)
    mean4 = jnp.dot(colsum, avg4_ref[...], preferred_element_type=f32) * inv_cnt
    d = ys_all - mean4
    colsq = jnp.sum(d * d, axis=0, keepdims=True)                  # (1, 4C)
    var4 = jnp.dot(colsq, avg4_ref[...], preferred_element_type=f32) * inv_cnt
    inv_std4 = jax.lax.rsqrt(var4 + 1e-5)

    # ---- spatial sigmoid gate (one wide sigmoid instead of 4) ----
    s_att = _sigmoid(d * inv_std4 * gamma4 + beta4)                # (N, 4C)
    x1_all = x4 * s_att                                            # (N, 4C)

    # ---- time conv (both frames, all positions) + x1 replication : ONE matmul ----
    # w2 = [kron(I_4, wt_taps) | kron(I_4, [I I])]
    zr = jnp.dot(x1_all, w2_ref[...], preferred_element_type=f32)  # (N, 16C)
    t_att = _sigmoid(zr[:, :c8] + bt8)                             # (N, 8C)
    x2_all = zr[:, c8:] * t_att                                    # (N, 8C)

    # ---- final 1x1x1 conv for all 8 output voxels : ONE matmul, ONE store ----
    # wf = kron(I_8, final_w^T);  output is lane-dense (N, 8C) -> unmasked store.
    out = jnp.dot(x2_all, wf_ref[...], preferred_element_type=f32) + bf8
    o_ref[...] = out.astype(o_ref.dtype)


# ------------------------------- parameters ----------------------------------

def init_params(key, c):
    k = jax.random.split(key, 6)

    def conv_init(kw_, kb_, shape):
        fan_in = shape[1] * shape[2] * shape[3] * shape[4]
        bound = 1.0 / jnp.sqrt(jnp.float32(fan_in))
        w = jax.random.uniform(kw_, shape, jnp.float32, -bound, bound)
        b = jax.random.uniform(kb_, (shape[0],), jnp.float32, -bound, bound)
        return w, b

    sw, sb = conv_init(k[0], k[1], (c, c, 1, 2, 2))   # space_conv
    tw, tb = conv_init(k[2], k[3], (c, c, 2, 1, 1))   # time_conv
    fw, fb = conv_init(k[4], k[5], (c, c, 1, 1, 1))   # final_conv
    gamma = jnp.ones((c,), jnp.float32)               # BatchNorm3d default affine
    beta = jnp.zeros((c,), jnp.float32)
    return dict(space_w=sw, space_b=sb, time_w=tw, time_b=tb,
                gamma=gamma, beta=beta, final_w=fw, final_b=fb)


def prepare_params(params):
    """One-time weight re-layout (hoisted out of the jitted hot path).

    Spatial output position p = ho*2 + wo uses space tap (0, 1-ho, 1-wo);
    time output frame do uses time tap kd = 1-do.
    """
    f32 = jnp.float32
    sw = params["space_w"].astype(f32)                 # (C, C, 1, 2, 2)
    tw = params["time_w"].astype(f32)                  # (C, C, 2, 1, 1)
    fw = params["final_w"].astype(f32)                 # (C, C, 1, 1, 1)
    c = sw.shape[0]
    eye = jnp.eye(c, dtype=f32)

    ws_cat = jnp.concatenate([sw[:, :, 0, 1 - ho, 1 - wo].T
                              for ho in (0, 1) for wo in (0, 1)], axis=1)       # (C, 4C)
    rep4 = jnp.concatenate([eye] * 4, axis=1)                                   # (C, 4C)
    w1 = jnp.concatenate([ws_cat, rep4], axis=1)                                # (C, 8C)

    avg4 = jnp.kron(jnp.ones((4, 4), f32), eye)                                 # (4C, 4C)

    wt_cat = jnp.concatenate([tw[:, :, 1 - do, 0, 0].T for do in (0, 1)], axis=1)   # (C, 2C)
    wt_big = jnp.kron(jnp.eye(4, dtype=f32), wt_cat)                            # (4C, 8C)
    rep2 = jnp.kron(jnp.eye(4, dtype=f32), jnp.concatenate([eye, eye], axis=1)) # (4C, 8C)
    w2 = jnp.concatenate([wt_big, rep2], axis=1)                                # (4C, 16C)

    wf_big = jnp.kron(jnp.eye(8, dtype=f32), fw[:, :, 0, 0, 0].T)               # (8C, 8C)

    t8 = lambda v: jnp.tile(v.astype(f32).reshape(1, c), (1, 8))                # (1, 8C)
    rows = jnp.concatenate([t8(params["space_b"]), t8(params["gamma"]),
                            t8(params["beta"]), t8(params["time_b"]),
                            t8(params["final_b"])], axis=0)                     # (5, 8C)
    return dict(w1=w1, avg4=avg4, w2=w2, wf_big=wf_big, rows=rows)


# ------------------------------- forward pass ---------------------------------

@jax.jit
def attn_block_forward(x_ncdhw, prep):
    N, C, D, H, W = x_ncdhw.shape
    # The reference forward's broadcasts only hold for D == H == W == 1.
    assert D == 1 and H == 1 and W == 1, "AttnBlock forward requires D = H = W = 1"
    # C % 32 keeps every in-kernel lane slice aligned to the 128-lane vreg (f32).
    assert C % 32 == 0, "this kernel requires in_channels % 32 == 0"
    f32 = jnp.float32
    x2d = x_ncdhw.reshape(N, C).astype(f32)

    vmem = pl.BlockSpec(memory_space=pltpu.MemorySpace.VMEM)   # whole array in VMEM

    out_flat = pl.pallas_call(
        _attn_fused_kernel,
        out_shape=jax.ShapeDtypeStruct((N, 8 * C), f32),
        in_specs=[vmem] * 6,
        out_specs=vmem,
    )(x2d, prep["w1"], prep["avg4"], prep["w2"], prep["wf_big"], prep["rows"])

    # Lane groups ordered (ho, wo, do)  ->  NCDHW (N, C, 2, 2, 2).
    out = out_flat.reshape(N, 2, 2, 2, C)
    return jnp.transpose(out, (0, 4, 3, 1, 2))

# TODO(synk): BatchNorm3d running_mean/running_var buffer updates (training-mode
# side effect) are not materialized; they do not affect the forward output.


# ------------------------ pure-JAX reference (check) ---------------------------

def _ref_conv3d(v, w, b, pad):
    dn = jax.lax.conv_dimension_numbers(v.shape, w.shape, ("NCDHW", "OIDHW", "NCDHW"))
    y = jax.lax.conv_general_dilated(
        v, w, window_strides=(1, 1, 1), padding=[(p, p) for p in pad],
        dimension_numbers=dn, precision=jax.lax.Precision.HIGHEST)
    return y + b.reshape(1, -1, 1, 1, 1)


def _ref_forward(x, params):
    y = _ref_conv3d(x, params["space_w"], params["space_b"], (0, 1, 1))
    mean = jnp.mean(y, axis=(0, 2, 3, 4), keepdims=True)
    var = jnp.mean(jnp.square(y - mean), axis=(0, 2, 3, 4), keepdims=True)
    g = params["gamma"].reshape(1, -1, 1, 1, 1)
    b = params["beta"].reshape(1, -1, 1, 1, 1)
    s_att = jax.nn.sigmoid((y - mean) * jax.lax.rsqrt(var + 1e-5) * g + b)
    x1 = x * s_att
    t_att = jax.nn.sigmoid(_ref_conv3d(x1, params["time_w"], params["time_b"], (1, 0, 0)))
    x2 = x1 * t_att
    return _ref_conv3d(x2, params["final_w"], params["final_b"], (0, 0, 0))


if __name__ == "__main__":
    key = jax.random.PRNGKey(0)
    kx, kp = jax.random.split(key)
    N, C = 2, 32
    # D = H = W = 1 is the only spatial shape for which the reference forward's
    # broadcasts are valid (the convs grow each gated dim by +1).
    D = H = W = 1
    x = jax.random.normal(kx, (N, C, D, H, W), jnp.float32)
    params = init_params(kp, C)
    prep = prepare_params(params)          # one-time weight re-layout (not in hot path)

    out = attn_block_forward(x, prep)
    out = jax.block_until_ready(out)

    assert out.shape == (N, C, D + 1, H + 1, W + 1), out.shape
    assert bool(jnp.all(jnp.isfinite(out)))

    ref = _ref_forward(x, params)
    err = float(jnp.max(jnp.abs(out - ref)))
    assert err < 1e-3, f"mismatch vs pure-JAX reference: {err}"
    print("KERNEL_OK")
</pallas_src>

<mosaic_0001>
module attributes {stable_mosaic.version = 11 : i64} {
  func.func @_attn_fused_kernel(%arg0: memref<2x32xf32, #tpu.memory_space<vmem>>, %arg1: memref<32x256xf32, #tpu.memory_space<vmem>>, %arg2: memref<128x128xf32, #tpu.memory_space<vmem>>, %arg3: memref<128x512xf32, #tpu.memory_space<vmem>>, %arg4: memref<256x256xf32, #tpu.memory_space<vmem>>, %arg5: memref<5x256xf32, #tpu.memory_space<vmem>>, %arg6: memref<2x256xf32, #tpu.memory_space<vmem>>) attributes {dimension_semantics = [], scalar_prefetch = 0 : i64, scratch_operands = 0 : i64, tpu.core_type = #tpu.core_type<tc>} {
    %c0 = arith.constant 0 : index
    %c0_0 = arith.constant 0 : index
    %0 = vector.load %arg0[%c0, %c0_0] : memref<2x32xf32, #tpu.memory_space<vmem>>, vector<2x32xf32>
    %c0_1 = arith.constant 0 : index
    %c0_2 = arith.constant 0 : index
    %1 = vector.load %arg5[%c0_1, %c0_2] : memref<5x256xf32, #tpu.memory_space<vmem>>, vector<1x128xf32>
    %c1 = arith.constant 1 : index
    %c0_3 = arith.constant 0 : index
    %2 = vector.load %arg5[%c1, %c0_3] : memref<5x256xf32, #tpu.memory_space<vmem>>, vector<1x128xf32>
    %c2 = arith.constant 2 : index
    %c0_4 = arith.constant 0 : index
    %3 = vector.load %arg5[%c2, %c0_4] : memref<5x256xf32, #tpu.memory_space<vmem>>, vector<1x128xf32>
    %c3 = arith.constant 3 : index
    %c0_5 = arith.constant 0 : index
    %4 = vector.load %arg5[%c3, %c0_5] : memref<5x256xf32, #tpu.memory_space<vmem>>, vector<1x256xf32>
    %c4 = arith.constant 4 : index
    %c0_6 = arith.constant 0 : index
    %5 = vector.load %arg5[%c4, %c0_6] : memref<5x256xf32, #tpu.memory_space<vmem>>, vector<1x256xf32>
    %c0_7 = arith.constant 0 : index
    %c0_8 = arith.constant 0 : index
    %6 = vector.load %arg1[%c0_7, %c0_8] : memref<32x256xf32, #tpu.memory_space<vmem>>, vector<32x256xf32>
    %cst = arith.constant dense<0.000000e+00> : vector<2x256xf32>
    %7 = tpu.matmul %0, %6, %cst {dimension_numbers = #tpu.dot_dimension_numbers<[1], [0], [0], [1], [0, 0, 1, 1], [], []>} : vector<2x32xf32>, vector<32x256xf32>, vector<2x256xf32> -> vector<2x256xf32>
    %8 = vector.extract_strided_slice %7 {offsets = [0, 0], sizes = [2, 128], strides = [1, 1]} : vector<2x256xf32> to vector<2x128xf32>
    %9 = vector.broadcast %1 : vector<1x128xf32> to vector<2x128xf32>
    %10 = arith.addf %8, %9 : vector<2x128xf32>
    %11 = vector.extract_strided_slice %7 {offsets = [0, 128], sizes = [2, 128], strides = [1, 1]} : vector<2x256xf32> to vector<2x128xf32>
    %cst_9 = arith.constant dense<0.000000e+00> : vector<128xf32>
    %12 = vector.multi_reduction <add>, %10, %cst_9 [0] : vector<2x128xf32> to vector<128xf32>
    %13 = vector.shape_cast %12 : vector<128xf32> to vector<1x128xf32>
    %c0_10 = arith.constant 0 : index
    %c0_11 = arith.constant 0 : index
    %14 = vector.load %arg2[%c0_10, %c0_11] : memref<128x128xf32, #tpu.memory_space<vmem>>, vector<128x128xf32>
    %cst_12 = arith.constant dense<0.000000e+00> : vector<1x128xf32>
    %15 = tpu.matmul %13, %14, %cst_12 {dimension_numbers = #tpu.dot_dimension_numbers<[1], [0], [0], [1], [0, 0, 1, 1], [], []>} : vector<1x128xf32>, vector<128x128xf32>, vector<1x128xf32> -> vector<1x128xf32>
    %cst_13 = arith.constant 1.250000e-01 : f32
    %16 = vector.broadcast %cst_13 : f32 to vector<1x128xf32>
    %17 = arith.mulf %15, %16 : vector<1x128xf32>
    %18 = vector.broadcast %17 : vector<1x128xf32> to vector<2x128xf32>
    %19 = arith.subf %10, %18 : vector<2x128xf32>
    %20 = arith.mulf %19, %19 : vector<2x128xf32>
    %cst_14 = arith.constant dense<0.000000e+00> : vector<128xf32>
    %21 = vector.multi_reduction <add>, %20, %cst_14 [0] : vector<2x128xf32> to vector<128xf32>
    %22 = vector.shape_cast %21 : vector<128xf32> to vector<1x128xf32>
    %c0_15 = arith.constant 0 : index
    %c0_16 = arith.constant 0 : index
    %23 = vector.load %arg2[%c0_15, %c0_16] : memref<128x128xf32, #tpu.memory_space<vmem>>, vector<128x128xf32>
    %cst_17 = arith.constant dense<0.000000e+00> : vector<1x128xf32>
    %24 = tpu.matmul %22, %23, %cst_17 {dimension_numbers = #tpu.dot_dimension_numbers<[1], [0], [0], [1], [0, 0, 1, 1], [], []>} : vector<1x128xf32>, vector<128x128xf32>, vector<1x128xf32> -> vector<1x128xf32>
    %cst_18 = arith.constant 1.250000e-01 : f32
    %25 = vector.broadcast %cst_18 : f32 to vector<1x128xf32>
    %26 = arith.mulf %24, %25 : vector<1x128xf32>
    %cst_19 = arith.constant 9.99999974E-6 : f32
    %27 = vector.broadcast %cst_19 : f32 to vector<1x128xf32>
    %28 = arith.addf %26, %27 : vector<1x128xf32>
    %29 = math.rsqrt %28 : vector<1x128xf32>
    %30 = vector.broadcast %29 : vector<1x128xf32> to vector<2x128xf32>
    %31 = arith.mulf %19, %30 : vector<2x128xf32>
    %32 = vector.broadcast %2 : vector<1x128xf32> to vector<2x128xf32>
    %33 = arith.mulf %31, %32 : vector<2x128xf32>
    %34 = vector.broadcast %3 : vector<1x128xf32> to vector<2x128xf32>
    %35 = arith.addf %33, %34 : vector<2x128xf32>
    %cst_20 = arith.constant 0.000000e+00 : f32
    %36 = vector.broadcast %cst_20 : f32 to vector<2x128xf32>
    %37 = arith.subf %36, %35 : vector<2x128xf32>
    %38 = math.exp %37 : vector<2x128xf32>
    %cst_21 = arith.constant 1.000000e+00 : f32
    %39 = vector.broadcast %cst_21 : f32 to vector<2x128xf32>
    %40 = arith.addf %39, %38 : vector<2x128xf32>
    %cst_22 = arith.constant 1.000000e+00 : f32
    %41 = vector.broadcast %cst_22 : f32 to vector<2x128xf32>
    %42 = arith.divf %41, %40 : vector<2x128xf32>
    %43 = arith.mulf %11, %42 : vector<2x128xf32>
    %c0_23 = arith.constant 0 : index
    %c0_24 = arith.constant 0 : index
    %44 = vector.load %arg3[%c0_23, %c0_24] : memref<128x512xf32, #tpu.memory_space<vmem>>, vector<128x512xf32>
    %cst_25 = arith.constant dense<0.000000e+00> : vector<2x512xf32>
    %45 = tpu.matmul %43, %44, %cst_25 {dimension_numbers = #tpu.dot_dimension_numbers<[1], [0], [0], [1], [0, 0, 1, 1], [], []>} : vector<2x128xf32>, vector<128x512xf32>, vector<2x512xf32> -> vector<2x512xf32>
    %46 = vector.extract_strided_slice %45 {offsets = [0, 0], sizes = [2, 256], strides = [1, 1]} : vector<2x512xf32> to vector<2x256xf32>
    %47 = vector.broadcast %4 : vector<1x256xf32> to vector<2x256xf32>
    %48 = arith.addf %46, %47 : vector<2x256xf32>
    %cst_26 = arith.constant 0.000000e+00 : f32
    %49 = vector.broadcast %cst_26 : f32 to vector<2x256xf32>
    %50 = arith.subf %49, %48 : vector<2x256xf32>
    %51 = math.exp %50 : vector<2x256xf32>
    %cst_27 = arith.constant 1.000000e+00 : f32
    %52 = vector.broadcast %cst_27 : f32 to vector<2x256xf32>
    %53 = arith.addf %52, %51 : vector<2x256xf32>
    %cst_28 = arith.constant 1.000000e+00 : f32
    %54 = vector.broadcast %cst_28 : f32 to vector<2x256xf32>
    %55 = arith.divf %54, %53 : vector<2x256xf32>
    %56 = vector.extract_strided_slice %45 {offsets = [0, 256], sizes = [2, 256], strides = [1, 1]} : vector<2x512xf32> to vector<2x256xf32>
    %57 = arith.mulf %56, %55 : vector<2x256xf32>
    %c0_29 = arith.constant 0 : index
    %c0_30 = arith.constant 0 : index
    %58 = vector.load %arg4[%c0_29, %c0_30] : memref<256x256xf32, #tpu.memory_space<vmem>>, vector<256x256xf32>
    %cst_31 = arith.constant dense<0.000000e+00> : vector<2x256xf32>
    %59 = tpu.matmul %57, %58, %cst_31 {dimension_numbers = #tpu.dot_dimension_numbers<[1], [0], [0], [1], [0, 0, 1, 1], [], []>} : vector<2x256xf32>, vector<256x256xf32>, vector<2x256xf32> -> vector<2x256xf32>
    %60 = vector.broadcast %5 : vector<1x256xf32> to vector<2x256xf32>
    %61 = arith.addf %59, %60 : vector<2x256xf32>
    %c0_32 = arith.constant 0 : index
    %c0_33 = arith.constant 0 : index
    %62 = vector.load %arg6[%c0_32, %c0_33] : memref<2x256xf32, #tpu.memory_space<vmem>>, vector<2x256xf32>
    tpu.vector_store %arg6[%c0_32, %c0_33], %61 {strides = array<i32>} : memref<2x256xf32, #tpu.memory_space<vmem>>, vector<2x256xf32>,
    return
  }
}

</mosaic_0001>

<bundles_post_ra>
// kernel: attn_block_forward.1
= control target key start
LH: loop header
LB: loop body
LE: loop exit
PB: predicated region body
PF: predicated region fallthrough
CT: control target
= control target key end

     0   :  { %11 = vsyncpa [#allocation3], 0  ;;  %s1366_s0 = inlined_call_operand.vmem [shape: f32[2,32], index: 0, kind: input, shape index: {}]   ;;  %s1367_s1 = inlined_call_operand.hbm [shape: f32[32,256], index: 1, kind: input, shape index: {}]   ;;  %s1368_s2 = inlined_call_operand.hbm [shape: f32[128,128], index: 2, kind: input, shape index: {}]   ;;  %s1369_s3 = inlined_call_operand.hbm [shape: f32[128,512], index: 3, kind: input, shape index: {}]   ;;  %s1370_s4 = inlined_call_operand.hbm [shape: f32[256,256], index: 4, kind: input, shape index: {}]   ;;  %s1371_s5 = inlined_call_operand.hbm [shape: f32[5,256], index: 5, kind: input, shape index: {}]   ;;  %s1372_s6 = inlined_call_operand.vmem [shape: f32[2,256], index: 6, kind: output, shape index: {}]  }
   0x1   :  { %12 = vsyncpa [#allocation5], 0 }
   0x2   :  { %13 = vsyncpa [#allocation8], 0  ;;  %s1208_s21 = smov [#allocation4]   ;;  %s1092_s25 = scalar_lea.hbm %s1368_s2, 2048 }
   0x3   :  { %s33_s22 = sshll.u32 %s1208_s21, 4  ;;  %p1093_p0 = scmp.ne.s32.totalorder %s1368_s2, %s1092_s25  ;;  %s34_s22 = int_to_ptr.vmem [resolvable:$true] %s33_s22 }
   0x4   :  { %p1096_p1 = scmp.lt.u32.totalorder %s1092_s25, %s1368_s2 }
   0x6   :  { %p1098_p2 = pnand %p1096_p1, %p1093_p0 }
   0x8   :  { %1101 = shalt.err (!%p1098_p2)
}
   0x9   :  { %s1102_s30 = scalar_lea.vmem %s34_s22, 2048  ;;  %p1107_p4 = scmp.lt.s32.totalorder %s34_s22, %s34_s22 }
   0xa   :  { %p1103_p3 = scmp.ne.s32.totalorder %s34_s22, %s1102_s30  ;;  %p1108_p5 = scmp.lt.s32.totalorder %s1102_s30, %s1102_s30 }
   0xc   :  { %p1109_p6 = por %p1108_p5, %p1107_p4 }
   0xe   :  { %p1110_p7 = pnand %p1109_p6, %p1103_p3 }
  0x10   :  { %1113 = shalt.err (!%p1110_p7)
}
  0x11   :  { %s1209_s7 = smov 128   ;;  %s1210_s8 = smov 8  }
  0x12   :  { %39 = dma.hbm_to_vmem [thread:$0]  %s1368_s2, 2048, %s34_s22, [#allocation5], %s1209_s7, %s1209_s7, %s1210_s8  }
  0x13   :  { %s1211_s11 = smov [#allocation7]   ;;  %s1212_s13 = smov [#allocation2]  }
  0x14   :  { %s57_s12 = sshll.u32 %s1211_s11, 4  ;;  %s21_s14 = sshll.u32 %s1212_s13, 4  ;;  %s58_s12 = int_to_ptr.vmem [resolvable:$true] %s57_s12  ;;  %s22_s14 = int_to_ptr.vmem [resolvable:$true] %s21_s14 }
  0x15   :  { %s1114_s17 = scalar_lea.hbm %s1370_s4, 8192 }
  0x16   :  { %p1115_p8 = scmp.ne.s32.totalorder %s1370_s4, %s1114_s17  ;;  %p1118_p9 = scmp.lt.u32.totalorder %s1114_s17, %s1370_s4 }
  0x18   :  { %p1120_p10 = pnand %p1118_p9, %p1115_p8 }
  0x1a   :  { %1123 = shalt.err (!%p1120_p10)
}
  0x1b   :  { %s1124_s2 = scalar_lea.vmem %s58_s12, 8192  ;;  %p1129_p12 = scmp.lt.s32.totalorder %s58_s12, %s58_s12 }
  0x1c   :  { %p1125_p11 = scmp.ne.s32.totalorder %s58_s12, %s1124_s2  ;;  %p1130_p13 = scmp.lt.s32.totalorder %s1124_s2, %s1124_s2 }
  0x1e   :  { %p1131_p0 = por %p1130_p13, %p1129_p12 }
  0x20   :  { %p1132_p1 = pnand %p1131_p0, %p1125_p11 }
  0x22   :  { %1135 = shalt.err (!%p1132_p1)
}
  0x23   :  { %s1213_s22 = smov 256   ;;  %s1214_s23 = smov 16  }
  0x24   :  { %63 = dma.hbm_to_vmem [thread:$0]  %s1370_s4, 8192, %s58_s12, [#allocation8], %s1213_s22, %s1213_s22, %s1214_s23  }
  0x25   :  { %s1136_s28 = scalar_lea.hbm %s1367_s1, 1024 }
  0x26   :  { %p1137_p2 = scmp.ne.s32.totalorder %s1367_s1, %s1136_s28  ;;  %p1140_p3 = scmp.lt.u32.totalorder %s1136_s28, %s1367_s1 }
  0x28   :  { %p1142_p4 = pnand %p1140_p3, %p1137_p2 }
  0x2a   :  { %1145 = shalt.err (!%p1142_p4)
}
  0x2b   :  { %s1146_s9 = scalar_lea.vmem %s22_s14, 1024  ;;  %p1151_p6 = scmp.lt.s32.totalorder %s22_s14, %s22_s14 }
  0x2c   :  { %p1147_p5 = scmp.ne.s32.totalorder %s22_s14, %s1146_s9  ;;  %p1152_p7 = scmp.lt.s32.totalorder %s1146_s9, %s1146_s9 }
  0x2e   :  { %p1153_p8 = por %p1152_p7, %p1151_p6 }
  0x30   :  { %p1154_p9 = pnand %p1153_p8, %p1147_p5 }
  0x32   :  { %1157 = shalt.err (!%p1154_p9)
}
  0x33   :  { %27 = dma.hbm_to_vmem [thread:$0]  %s1367_s1, 1024, %s22_s14, [#allocation3], %s1213_s22, %s1213_s22, %s1214_s23  }
  0x34   :  { %s1215_s11 = smov [#allocation6]   ;;  %s1158_s16 = scalar_lea.hbm %s1369_s3, 8192 }
  0x35   :  { %s45_s12 = sshll.u32 %s1215_s11, 4  ;;  %p1159_p10 = scmp.ne.s32.totalorder %s1369_s3, %s1158_s16  ;;  %s46_s12 = int_to_ptr.vmem [resolvable:$true] %s45_s12 }
  0x36   :  { %p1162_p11 = scmp.lt.u32.totalorder %s1158_s16, %s1369_s3 }
  0x38   :  { %p1164_p12 = pnand %p1162_p11, %p1159_p10 }
  0x3a   :  { %1167 = shalt.err (!%p1164_p12)
}
  0x3b   :  { %s1168_s21 = scalar_lea.vmem %s46_s12, 8192  ;;  %p1173_p0 = scmp.lt.s32.totalorder %s46_s12, %s46_s12 }
  0x3c   :  { %p1169_p13 = scmp.ne.s32.totalorder %s46_s12, %s1168_s21  ;;  %p1174_p1 = scmp.lt.s32.totalorder %s1168_s21, %s1168_s21 }
  0x3e   :  { %p1175_p2 = por %p1174_p1, %p1173_p0 }
  0x40   :  { %p1176_p3 = pnand %p1175_p2, %p1169_p13 }
  0x42   :  { %1179 = shalt.err (!%p1176_p3)
}
  0x43   :  { %s1216_s1 = smov 512   ;;  %s1217_s14 = smov 32  }
  0x44   :  { %51 = dma.hbm_to_vmem [thread:$0]  %s1369_s3, 8192, %s46_s12, [#allocation5], %s1216_s1, %s1216_s1, %s1217_s14  }
  0x45   :  { %s1218_s23 = smov [#allocation9]   ;;  %s1180_s27 = scalar_lea.hbm %s1371_s5, 256 }
  0x46   :  { %s70_s24 = sshll.u32 %s1218_s23, 4  ;;  %p1181_p4 = scmp.ne.s32.totalorder %s1371_s5, %s1180_s27  ;;  %s71_s24 = int_to_ptr.vmem [resolvable:$true] %s70_s24 }
  0x47   :  { %p1184_p5 = scmp.lt.u32.totalorder %s1180_s27, %s1371_s5 }
  0x49   :  { %p1186_p6 = pnand %p1184_p5, %p1181_p4 }
  0x4b   :  { %1189 = shalt.err (!%p1186_p6)
}
  0x4c   :  { %s1190_s8 = scalar_lea.vmem %s71_s24, 256  ;;  %p1195_p8 = scmp.lt.s32.totalorder %s71_s24, %s71_s24 }
  0x4d   :  { %p1191_p7 = scmp.ne.s32.totalorder %s71_s24, %s1190_s8  ;;  %p1196_p9 = scmp.lt.s32.totalorder %s1190_s8, %s1190_s8 }
  0x4f   :  { %p1197_p10 = por %p1196_p9, %p1195_p8 }
  0x51   :  { %p1198_p11 = pnand %p1197_p10, %p1191_p7 }
  0x53   :  { %1201 = shalt.err (!%p1198_p11)
}
  0x54   :  { %73 = dma.hbm_to_vmem [thread:$0]  %s1371_s5, 256, %s71_s24, [#allocation8]  }
  0x55   :  { %1202 = dma.done.wait [#allocation3], 1024  }
  0x56   :  { %1203 = vsyncadd [#allocation3], 4294966272 }
  0x57   :  { %1204 = dma.done.wait [#allocation5], 10240  }
  0x58   :  { %1205 = vsyncadd [#allocation5], 4294957056 }
  0x59   :  { %1206 = dma.done.wait [#allocation8], 8448  }
  0x5a   :  { %1207 = vsyncadd [#allocation8], 4294958848  ;;  %v1219_v0 = vmov 0.0   ;;  %v98_v1 = vld [vmem:[#allocation2 + $0x8] sm:$0xff]  ;;  %v100_v2 = vld [vmem:[#allocation2 + $0x18] sm:$0xff]  ;;  %vm105_vm0 = vcmask 261120   ;;  %v276_v50 = vlaneseq }
  0x5b   :  { %173 = vmatprep.mubr.f32.mxu0 %v1219_v0  ;;  %504 = vmatprep.mubr.f32.mxu1 %v1219_v0  ;;  %v97_v3 = vld [vmem:[#allocation2] sm:$0xff]  ;;  %v880_v4 = vpack.c.bf16 %v100_v2, %v98_v1  ;;  %v99_v5 = vld [vmem:[#allocation2 + $0x10] sm:$0xff]  ;;  %v102_v6 = vld [vmem:[#allocation2 + $0x28] sm:$0xff]  ;;  %v1220_v17 = vmov 0.0|0.0   ;;  %vm1221_vm1 = vmmov 0   ;;  %vm181_vm2 = vcmask 1041408  }
  0x5c   :  { %v104_v7 = vld [vmem:[#allocation2 + $0x38] sm:$0xff]  ;;  %v882_v8 = vpack.c.bf16 %v99_v5, %v97_v3  ;;  %v101_v10 = vld [vmem:[#allocation2 + $0x20] sm:$0xff]  ;;  %v103_v11 = vld [vmem:[#allocation2 + $0x30] sm:$0xff]  ;;  %v1345_v51 = vshrl.u32 %v276_v50, 7 }
  0x5d   :  { %v884_v9 = vpack.c.bf16 %v104_v7, %v102_v6  ;;  %881 = vmatprep.subr.bf16.mxu0 %v880_v4  ;;  %v886_v12 = vpack.c.bf16 %v103_v11, %v101_v10  ;;  %v189_v13 = vld [vmem:[#allocation4] sm:$0xff]  ;;  %v190_v14 = vld [vmem:[#allocation4 + $0x8] sm:$0xff]  ;;  %v191_v18 = vld [vmem:[#allocation4 + $0x10] sm:$0xff] }
  0x5e   :  { %883 = vmatpush1.bf16.msra.mxu0 %v882_v8  ;;  %v89_v15 = vld [vmem:[%s1366_s0] sm:$0x3]  ;;  %v889_v16 = vpack.c.bf16 %v190_v14, %v189_v13  ;;  %v192_v19 = vld [vmem:[#allocation4 + $0x18] sm:$0xff]  ;;  %v194_v22 = vld [vmem:[#allocation4 + $0x28] sm:$0xff]  ;;  %v1348_v52 = vsub.s32 0, %v1345_v51 }
  0x5f   :  { %885 = vmatprep.subr.bf16.mxu0 %v884_v9  ;;  %v892_v20 = vpack.c.bf16 %v192_v19, %v191_v18  ;;  %v193_v21 = vld [vmem:[#allocation4 + $0x20] sm:$0xff]  ;;  %v195_v24 = vld [vmem:[#allocation4 + $0x30] sm:$0xff]  ;;  %v196_v25 = vld [vmem:[#allocation4 + $0x38] sm:$0xff] }
  0x60   :  { %v895_v23 = vpack.c.bf16 %v194_v22, %v193_v21  ;;  %v898_v26 = vpack.c.bf16 %v196_v25, %v195_v24  ;;  %v197_v27 = vld [vmem:[#allocation4 + $0x40] sm:$0xff]  ;;  %v198_v28 = vld [vmem:[#allocation4 + $0x48] sm:$0xff]  ;;  %v199_v30 = vld [vmem:[#allocation4 + $0x50] sm:$0xff] }
  0x61   :  { %v901_v29 = vpack.c.bf16 %v198_v28, %v197_v27  ;;  %v200_v31 = vld [vmem:[#allocation4 + $0x58] sm:$0xff]  ;;  %v201_v33 = vld [vmem:[#allocation4 + $0x60] sm:$0xff]  ;;  %v202_v34 = vld [vmem:[#allocation4 + $0x68] sm:$0xff] }
  0x62   :  { %887 = vmatpush1.bf16.msra.mxu0 %v886_v12  ;;  %v904_v32 = vpack.c.bf16 %v200_v31, %v199_v30  ;;  %v907_v35 = vpack.c.bf16 %v202_v34, %v201_v33  ;;  %v203_v36 = vld [vmem:[#allocation4 + $0x70] sm:$0xff]  ;;  %v204_v37 = vld [vmem:[#allocation4 + $0x78] sm:$0xff]  ;;  %v90_v39 = vld [vmem:[#allocation9] ss:$0 sm:$0xff] }
  0x63   :  { %888 = vmatprep.subr.bf16.mxu0 %v1220_v17  ;;  %v910_v38 = vpack.c.bf16 %v204_v37, %v203_v36  ;;  %v377_v3 = vld [vmem:[#allocation6 + $0x8] sm:$0xff]  ;;  %v379_v5 = vld [vmem:[#allocation6 + $0x18] sm:$0xff]  ;;  %v376_v8 = vld [vmem:[#allocation6] sm:$0xff] }
  0x64   :  { %v381_v4 = vld [vmem:[#allocation6 + $0x28] sm:$0xff]  ;;  %v383_v7 = vld [vmem:[#allocation6 + $0x38] sm:$0xff]  ;;  %v380_v9 = vld [vmem:[#allocation6 + $0x20] sm:$0xff] }
  0x65   :  { %774 = vmatmul.mubr.msk.f32.vlgmr.msra.gmra.mrb[0].mxu0 %vm105_vm0, %v89_v15  ;;  %v936_v6 = vpack.c.bf16 %v381_v4, %v377_v3  ;;  %v968_v10 = vpack.c.bf16 %v383_v7, %v379_v5  ;;  %v938_v11 = vpack.c.bf16 %v380_v9, %v376_v8  ;;  %v378_v12 = vld [vmem:[#allocation6 + $0x10] sm:$0xff]  ;;  %v385_v15 = vld [vmem:[#allocation6 + $0x48] sm:$0xff]  ;;  %v391_v18 = vld [vmem:[#allocation6 + $0x78] sm:$0xff] }
  0x66   :  { %890 = vmatpush3.bf16.msra.mxu0 %v889_v16  ;;  %842 = vmatprep.mubr.msk.f32.mxu0 %vm1221_vm1, %v1219_v0  ;;  %v382_v13 = vld [vmem:[#allocation6 + $0x30] sm:$0xff]  ;;  %v384_v19 = vld [vmem:[#allocation6 + $0x40] sm:$0xff]  ;;  %v393_v25 = vld [vmem:[#allocation6 + $0x88] sm:$0xff] }
  0x67   :  { %891 = vmatprep.subr.bf16.mxu0 %v1220_v17  ;;  %937 = vmatprep.subr.bf16.mxu1 %v936_v6  ;;  %v970_v14 = vpack.c.bf16 %v382_v13, %v378_v12  ;;  %v390_v24 = vld [vmem:[#allocation6 + $0x70] sm:$0xff]  ;;  %v397_v27 = vld [vmem:[#allocation6 + $0xa8] sm:$0xff]  ;;  %v395_v28 = vld [vmem:[#allocation6 + $0x98] sm:$0xff] }
  0x68   :  { %939 = vmatpush1.bf16.msra.mxu1 %v938_v11  ;;  %v944_v30 = vpack.c.bf16 %v397_v27, %v393_v25  ;;  %v396_v33 = vld [vmem:[#allocation6 + $0xa0] sm:$0xff]  ;;  %v394_v34 = vld [vmem:[#allocation6 + $0x90] sm:$0xff]  ;;  %v401_v37 = vld [vmem:[#allocation6 + $0xc8] sm:$0xff] }
  0x69   :  { %v398_v36 = vld [vmem:[#allocation6 + $0xb0] sm:$0xff]  ;;  %v409_v50 = vld [vmem:[#allocation6 + $0x108] sm:$0xff]  ;;  %v419_v3 = vld [vmem:[#allocation6 + $0x158] sm:$0xff] }
  0x6a   :  { %893 = vmatpush3.bf16.msra.mxu0 %v892_v20  ;;  %v423_v4 = vld [vmem:[#allocation6 + $0x178] sm:$0xff]  ;;  %v416_v8 = vld [vmem:[#allocation6 + $0x140] sm:$0xff]  ;;  %v422_v12 = vld [vmem:[#allocation6 + $0x170] sm:$0xff] }
  0x6b   :  { %894 = vmatprep.subr.bf16.mxu0 %v1220_v17  ;;  %v420_v9 = vld [vmem:[#allocation6 + $0x160] sm:$0xff]  ;;  %v988_v11 = vpack.c.bf16 %v423_v4, %v419_v3  ;;  %v425_v13 = vld [vmem:[#allocation6 + $0x188] sm:$0xff]  ;;  %v439_v27 = vld [vmem:[#allocation6 + $0x1f8] sm:$0xff] }
  0x6c   :  { %v437_v25 = vld [vmem:[#allocation6 + $0x1e8] sm:$0xff] }
  0x6e   :  { %896 = vmatpush3.bf16.msra.mxu0 %v895_v23 }
  0x6f   :  { %897 = vmatprep.subr.bf16.mxu0 %v1220_v17 }
  0x72   :  { %899 = vmatpush3.bf16.msra.mxu0 %v898_v26 }
  0x73   :  { %900 = vmatprep.subr.bf16.mxu0 %v1220_v17 }
  0x76   :  { %902 = vmatpush3.bf16.msra.mxu0 %v901_v29 }
  0x77   :  { %903 = vmatprep.subr.bf16.mxu0 %v1220_v17 }
  0x7a   :  { %905 = vmatpush3.bf16.msra.mxu0 %v904_v32 }
  0x7b   :  { %906 = vmatprep.subr.bf16.mxu0 %v1220_v17 }
  0x7e   :  { %908 = vmatpush3.bf16.msra.mxu0 %v907_v35 }
  0x7f   :  { %909 = vmatprep.subr.bf16.mxu0 %v1220_v17 }
  0x82   :  { %911 = vmatpush3.bf16.msra.mxu0 %v910_v38 }
  0x83   :  { %912 = vmatprep.subr.bf16.mxu0 %v1220_v17 }
 0x138   :  { %v175_v40 = vpop.f32.mrb[0].mxu0 }
 0x139   :  { %v180_v41 = vadd.f32 %v175_v40, %v90_v39  ;;  %v1333_v42 = vpop.f32.mrb[1].mxu0  ;;  %v978_v39 = vpack.c.bf16 %v398_v36, %v394_v34  ;;  %v434_v34 = vld [vmem:[#allocation6 + $0x1d0] sm:$0xff] }
 0x13b   :  { %v182_v43 = vsel %vm181_vm2, %v180_v41, 0.0 }
 0x13c   :  { %v183_v44 = vrot.slane %v182_v43, 4 }
 0x13e   :  { %v184_v45 = vadd.f32 %v183_v44, %v182_v43  ;;  %v407_v43 = vld [vmem:[#allocation6 + $0xf8] sm:$0xff]  ;;  %v400_v44 = vld [vmem:[#allocation6 + $0xc0] sm:$0xff] }
 0x140   :  { %v185_v46 = vrot.slane %v184_v45, 2 }
 0x142   :  { %v186_v47 = vadd.f32 %v185_v46, %v184_v45  ;;  %v404_v46 = vld [vmem:[#allocation6 + $0xe0] sm:$0xff] }
 0x144   :  { %v187_v48 = vrot.slane %v186_v47, 1 }
 0x146   :  { %v188_v49 = vadd.f32 %v187_v48, %v186_v47  ;;  %v402_v47 = vld [vmem:[#allocation6 + $0xd0] sm:$0xff] }
 0x147   :  { %v406_v48 = vld [vmem:[#allocation6 + $0xf0] sm:$0xff] }
 0x148   :  { %843 = vmatmul.mubr.f32.vlgmr.msra.gmra.mrb[2].mxu0 %v188_v49  ;;  %v950_v49 = vpack.c.bf16 %v404_v46, %v400_v44 }
 0x149   :  { %914 = vmatpush3.bf16.msra.mxu0 %v889_v16  ;;  %877 = vmatprep.mubr.msk.f32.mxu0 %vm1221_vm1, %v1219_v0  ;;  %v389_v16 = vld [vmem:[#allocation6 + $0x68] sm:$0xff] }
 0x14a   :  { %915 = vmatprep.subr.bf16.mxu0 %v1220_v17 }
 0x14d   :  { %917 = vmatpush3.bf16.msra.mxu0 %v892_v20  ;;  %v388_v20 = vld [vmem:[#allocation6 + $0x60] sm:$0xff] }
 0x14e   :  { %918 = vmatprep.subr.bf16.mxu0 %v1220_v17  ;;  %v942_v22 = vpack.c.bf16 %v388_v20, %v384_v19  ;;  %v424_v19 = vld [vmem:[#allocation6 + $0x180] sm:$0xff] }
 0x14f   :  { %v428_v20 = vld [vmem:[#allocation6 + $0x1a0] sm:$0xff] }
 0x151   :  { %920 = vmatpush3.bf16.msra.mxu0 %v895_v23  ;;  %v386_v23 = vld [vmem:[#allocation6 + $0x50] sm:$0xff] }
 0x152   :  { %921 = vmatprep.subr.bf16.mxu0 %v1220_v17 }
 0x155   :  { %923 = vmatpush3.bf16.msra.mxu0 %v898_v26  ;;  %v974_v26 = vpack.c.bf16 %v390_v24, %v386_v23  ;;  %v430_v23 = vld [vmem:[#allocation6 + $0x1b0] sm:$0xff]  ;;  %v433_v24 = vld [vmem:[#allocation6 + $0x1c8] sm:$0xff] }
 0x156   :  { %924 = vmatprep.subr.bf16.mxu0 %v1220_v17 }
 0x159   :  { %926 = vmatpush3.bf16.msra.mxu0 %v901_v29  ;;  %v399_v29 = vld [vmem:[#allocation6 + $0xb8] sm:$0xff] }
 0x15a   :  { %927 = vmatprep.subr.bf16.mxu0 %v1220_v17  ;;  %v976_v31 = vpack.c.bf16 %v399_v29, %v395_v28  ;;  %v962_v28 = vpack.c.bf16 %v428_v20, %v424_v19  ;;  %v625_v20 = vld [vmem:[#allocation7 + $0x80] sm:$0xff] }
 0x15d   :  { %929 = vmatpush3.bf16.msra.mxu0 %v904_v32  ;;  %v392_v32 = vld [vmem:[#allocation6 + $0x80] sm:$0xff] }
 0x15e   :  { %930 = vmatprep.subr.bf16.mxu0 %v1220_v17 }
 0x161   :  { %932 = vmatpush3.bf16.msra.mxu0 %v907_v35  ;;  %v946_v35 = vpack.c.bf16 %v396_v33, %v392_v32  ;;  %v436_v32 = vld [vmem:[#allocation6 + $0x1e0] sm:$0xff] }
 0x162   :  { %933 = vmatprep.subr.bf16.mxu0 %v1220_v17  ;;  %v387_v17 = vld [vmem:[#allocation6 + $0x58] sm:$0xff] }
 0x163   :  { %v972_v21 = vpack.c.bf16 %v391_v18, %v387_v17  ;;  %v958_v17 = vpack.c.bf16 %v420_v9, %v416_v8 }
 0x165   :  { %935 = vmatpush3.bf16.msra.mxu0 %v910_v38  ;;  %v405_v38 = vld [vmem:[#allocation6 + $0xe8] sm:$0xff] }
 0x166   :  { %969 = vmatprep.subr.bf16.mxu0 %v968_v10  ;;  %v948_v40 = vpack.c.bf16 %v405_v38, %v401_v37  ;;  %v418_v10 = vld [vmem:[#allocation6 + $0x150] sm:$0xff]  ;;  %v610_v38 = vld [vmem:[#allocation7 + $0x8] sm:$0xff] }
 0x21b   :  { %v271_v53 = vpop.f32.mrb[2].mxu0 }
 0x21c   :  { %v275_v54 = vmul.f32 0.125, %v271_v53  ;;  %v844_v55 = vpop.f32.mrb[3].mxu0  ;;  %v413_v53 = vld [vmem:[#allocation6 + $0x128] sm:$0xff] }
 0x21d   :  { %v982_v55 = vpack.c.bf16 %v406_v48, %v402_v47  ;;  %v91_v48 = vld [vmem:[#allocation9 + $0x1] ss:$0 sm:$0xff] }
 0x21e   :  { %v279_v56 = vrot.slane %v275_v54, %v1348_v52  ;;  %v411_v54 = vld [vmem:[#allocation6 + $0x118] sm:$0xff] }
 0x220   :  { %v1351_v57 = vsub.f32 %v180_v41, %v279_v56  ;;  %v403_v41 = vld [vmem:[#allocation6 + $0xd8] sm:$0xff]  ;;  %v952_v56 = vpack.c.bf16 %v413_v53, %v409_v50  ;;  %v92_v50 = vld [vmem:[#allocation9 + $0x2] ss:$0 sm:$0xff] }
 0x221   :  { %v980_v45 = vpack.c.bf16 %v407_v43, %v403_v41 }
 0x222   :  { %v281_v58 = vmul.f32 %v1351_v57, %v1351_v57 }
 0x224   :  { %v282_v59 = vsel %vm181_vm2, %v281_v58, 0.0  ;;  %v415_v58 = vld [vmem:[#allocation6 + $0x138] sm:$0xff] }
 0x225   :  { %v283_v60 = vrot.slane %v282_v59, 4 }
 0x227   :  { %v284_v61 = vadd.f32 %v283_v60, %v282_v59  ;;  %v408_v59 = vld [vmem:[#allocation6 + $0x100] sm:$0xff] }
 0x228   :  { %v412_v60 = vld [vmem:[#allocation6 + $0x120] sm:$0xff] }
 0x229   :  { %v285_v62 = vrot.slane %v284_v61, 2  ;;  %v954_v5 = vpack.c.bf16 %v412_v60, %v408_v59  ;;  %v609_v60 = vld [vmem:[#allocation7] sm:$0xff] }
 0x22b   :  { %v286_v63 = vadd.f32 %v285_v62, %v284_v61  ;;  %v984_v61 = vpack.c.bf16 %v415_v58, %v411_v54  ;;  %v410_v62 = vld [vmem:[#allocation6 + $0x110] sm:$0xff] }
 0x22d   :  { %v287_v1 = vrot.slane %v286_v63, 1 }
 0x22f   :  { %v288_v2 = vadd.f32 %v287_v1, %v286_v63  ;;  %v414_v63 = vld [vmem:[#allocation6 + $0x130] sm:$0xff]  ;;  %v417_v1 = vld [vmem:[#allocation6 + $0x148] sm:$0xff] }
 0x230   :  { %v986_v6 = vpack.c.bf16 %v414_v63, %v410_v62  ;;  %v614_v62 = vld [vmem:[#allocation7 + $0x28] sm:$0xff]  ;;  %v616_v63 = vld [vmem:[#allocation7 + $0x38] sm:$0xff] }
 0x231   :  { %878 = vmatmul.mubr.f32.vlgmr.msra.gmra.mrb[4].mxu0 %v288_v2  ;;  %v421_v2 = vld [vmem:[#allocation6 + $0x168] sm:$0xff]  ;;  %v1004_v4 = vpack.c.bf16 %v616_v63, %v614_v62 }
 0x232   :  { %575 = vmatprep.mubr.f32.mxu0 %v1219_v0  ;;  %971 = vmatpush1.bf16.msra.mxu0 %v970_v14  ;;  %v940_v0 = vpack.c.bf16 %v389_v16, %v385_v15  ;;  %v956_v7 = vpack.c.bf16 %v421_v2, %v417_v1  ;;  %v429_v14 = vld [vmem:[#allocation6 + $0x1a8] sm:$0xff]  ;;  %v427_v15 = vld [vmem:[#allocation6 + $0x198] sm:$0xff] }
 0x233   :  { %973 = vmatprep.subr.bf16.mxu0 %v972_v21  ;;  %v431_v16 = vld [vmem:[#allocation6 + $0x1b8] sm:$0xff]  ;;  %v960_v18 = vpack.c.bf16 %v429_v14, %v425_v13  ;;  %v426_v21 = vld [vmem:[#allocation6 + $0x190] sm:$0xff]  ;;  %v654_v63 = vld [vmem:[#allocation7 + $0x168] sm:$0xff] }
 0x234   :  { %941 = vmatprep.subr.bf16.mxu1 %v940_v0  ;;  %v990_v0 = vpack.c.bf16 %v422_v12, %v418_v10  ;;  %v994_v29 = vpack.c.bf16 %v430_v23, %v426_v21  ;;  %v617_v10 = vld [vmem:[#allocation7 + $0x40] sm:$0xff]  ;;  %v622_v12 = vld [vmem:[#allocation7 + $0x68] sm:$0xff]  ;;  %v624_v13 = vld [vmem:[#allocation7 + $0x78] sm:$0xff] }
 0x235   :  { %943 = vmatpush1.bf16.msra.mxu1 %v942_v22  ;;  %v992_v22 = vpack.c.bf16 %v431_v16, %v427_v15  ;;  %v1012_v15 = vpack.c.bf16 %v624_v13, %v622_v12  ;;  %v623_v16 = vld [vmem:[#allocation7 + $0x70] sm:$0xff]  ;;  %v632_v23 = vld [vmem:[#allocation7 + $0xb8] sm:$0xff] }
 0x236   :  { %975 = vmatpush1.bf16.msra.mxu0 %v974_v26  ;;  %945 = vmatprep.subr.bf16.mxu1 %v944_v30  ;;  %v435_v26 = vld [vmem:[#allocation6 + $0x1d8] sm:$0xff]  ;;  %v964_v30 = vpack.c.bf16 %v437_v25, %v433_v24  ;;  %v627_v21 = vld [vmem:[#allocation7 + $0x90] sm:$0xff] }
 0x237   :  { %977 = vmatprep.subr.bf16.mxu0 %v976_v31  ;;  %v432_v31 = vld [vmem:[#allocation6 + $0x1c0] sm:$0xff]  ;;  %v996_v33 = vpack.c.bf16 %v439_v27, %v435_v26  ;;  %v1018_v24 = vpack.c.bf16 %v627_v21, %v625_v20  ;;  %v631_v27 = vld [vmem:[#allocation7 + $0xb0] sm:$0xff]  ;;  %v664_v12 = vld [vmem:[#allocation7 + $0x1b8] sm:$0xff] }
 0x238   :  { %v966_v36 = vpack.c.bf16 %v436_v32, %v432_v31  ;;  %v629_v26 = vld [vmem:[#allocation7 + $0xa0] sm:$0xff]  ;;  %v670_v21 = vld [vmem:[#allocation7 + $0x1e8] sm:$0xff] }
 0x239   :  { %947 = vmatpush1.bf16.msra.mxu1 %v946_v35  ;;  %v438_v35 = vld [vmem:[#allocation6 + $0x1f0] sm:$0xff]  ;;  %v633_v32 = vld [vmem:[#allocation7 + $0xc0] sm:$0xff] }
 0x23a   :  { %979 = vmatpush1.bf16.msra.mxu0 %v978_v39  ;;  %949 = vmatprep.subr.bf16.mxu1 %v948_v40  ;;  %v998_v37 = vpack.c.bf16 %v438_v35, %v434_v34  ;;  %v612_v39 = vld [vmem:[#allocation7 + $0x18] sm:$0xff]  ;;  %v638_v34 = vld [vmem:[#allocation7 + $0xe8] sm:$0xff] }
 0x23b   :  { %981 = vmatprep.subr.bf16.mxu0 %v980_v45  ;;  %v1000_v40 = vpack.c.bf16 %v612_v39, %v610_v38  ;;  %v640_v35 = vld [vmem:[#allocation7 + $0xf8] sm:$0xff]  ;;  %v637_v38 = vld [vmem:[#allocation7 + $0xe0] sm:$0xff]  ;;  %v639_v39 = vld [vmem:[#allocation7 + $0xf0] sm:$0xff] }
 0x23d   :  { %951 = vmatpush1.bf16.msra.mxu1 %v950_v49 }
 0x23e   :  { %983 = vmatpush1.bf16.msra.mxu0 %v982_v55  ;;  %953 = vmatprep.subr.bf16.mxu1 %v952_v56 }
 0x23f   :  { %985 = vmatprep.subr.bf16.mxu0 %v984_v61  ;;  %v611_v61 = vld [vmem:[#allocation7 + $0x10] sm:$0xff] }
 0x240   :  { %v1002_v2 = vpack.c.bf16 %v611_v61, %v609_v60  ;;  %v649_v60 = vld [vmem:[#allocation7 + $0x140] sm:$0xff]  ;;  %v651_v61 = vld [vmem:[#allocation7 + $0x150] sm:$0xff] }
 0x241   :  { %955 = vmatpush1.bf16.msra.mxu1 %v954_v5  ;;  %v613_v5 = vld [vmem:[#allocation7 + $0x20] sm:$0xff]  ;;  %v1042_v62 = vpack.c.bf16 %v651_v61, %v649_v60 }
 0x242   :  { %987 = vmatpush1.bf16.msra.mxu0 %v986_v6  ;;  %957 = vmatprep.subr.bf16.mxu1 %v956_v7  ;;  %v618_v6 = vld [vmem:[#allocation7 + $0x48] sm:$0xff]  ;;  %v620_v7 = vld [vmem:[#allocation7 + $0x58] sm:$0xff] }
 0x243   :  { %989 = vmatprep.subr.bf16.mxu0 %v988_v11  ;;  %v1008_v9 = vpack.c.bf16 %v620_v7, %v618_v6  ;;  %v619_v11 = vld [vmem:[#allocation7 + $0x50] sm:$0xff]  ;;  %v660_v6 = vld [vmem:[#allocation7 + $0x198] sm:$0xff] }
 0x244   :  { %v1010_v14 = vpack.c.bf16 %v619_v11, %v617_v10  ;;  %v662_v11 = vld [vmem:[#allocation7 + $0x1a8] sm:$0xff] }
 0x245   :  { %959 = vmatpush1.bf16.msra.mxu1 %v958_v17  ;;  %v626_v17 = vld [vmem:[#allocation7 + $0x88] sm:$0xff]  ;;  %v1052_v13 = vpack.c.bf16 %v664_v12, %v662_v11 }
 0x246   :  { %991 = vmatpush1.bf16.msra.mxu0 %v990_v0  ;;  %961 = vmatprep.subr.bf16.mxu1 %v960_v18  ;;  %v628_v0 = vld [vmem:[#allocation7 + $0x98] sm:$0xff] }
 0x247   :  { %993 = vmatprep.subr.bf16.mxu0 %v992_v22  ;;  %v1016_v19 = vpack.c.bf16 %v628_v0, %v626_v17  ;;  %v630_v22 = vld [vmem:[#allocation7 + $0xa8] sm:$0xff]  ;;  %v668_v17 = vld [vmem:[#allocation7 + $0x1d8] sm:$0xff] }
 0x248   :  { %v1020_v25 = vpack.c.bf16 %v632_v23, %v630_v22  ;;  %v672_v22 = vld [vmem:[#allocation7 + $0x1f8] sm:$0xff] }
 0x249   :  { %963 = vmatpush1.bf16.msra.mxu1 %v962_v28  ;;  %v634_v28 = vld [vmem:[#allocation7 + $0xc8] sm:$0xff]  ;;  %v1060_v23 = vpack.c.bf16 %v672_v22, %v670_v21 }
 0x24a   :  { %995 = vmatpush1.bf16.msra.mxu0 %v994_v29  ;;  %965 = vmatprep.subr.bf16.mxu1 %v964_v30  ;;  %v636_v29 = vld [vmem:[#allocation7 + $0xd8] sm:$0xff]  ;;  %v1022_v30 = vpack.c.bf16 %v631_v27, %v629_v26  ;;  %v94_v27 = vld [vmem:[#allocation9 + $0x3] ss:$8 sm:$0x3] }
 0x24b   :  { %997 = vmatprep.subr.bf16.mxu0 %v996_v33  ;;  %v1024_v31 = vpack.c.bf16 %v636_v29, %v634_v28  ;;  %v635_v33 = vld [vmem:[#allocation7 + $0xd0] sm:$0xff]  ;;  %v589_v28 = vsub.s32 1, %v1345_v51  ;;  %v586_v29 = vrot.slane %v94_v27, %v1348_v52 }
 0x24d   :  { %967 = vmatpush1.bf16.msra.mxu1 %v966_v36  ;;  %v1026_v36 = vpack.c.bf16 %v635_v33, %v633_v32 }
 0x24e   :  { %999 = vmatpush1.bf16.msra.mxu0 %v998_v37  ;;  %1001 = vmatprep.subr.bf16.mxu1 %v1000_v40  ;;  %v1028_v37 = vpack.c.bf16 %v640_v35, %v638_v34  ;;  %v1030_v40 = vpack.c.bf16 %v639_v39, %v637_v38 }
 0x304   :  { %v355_v41 = vpop.f32.mrb[4].mxu0 }
 0x305   :  { %v359_v43 = vmul.f32 0.125, %v355_v41  ;;  %v879_v44 = vpop.f32.mrb[5].mxu0  ;;  %v642_v41 = vld [vmem:[#allocation7 + $0x108] sm:$0xff] }
 0x307   :  { %v360_v45 = vadd.f32 1e-05, %v359_v43  ;;  %v644_v43 = vld [vmem:[#allocation7 + $0x118] sm:$0xff] }
 0x308   :  { %v1032_v44 = vpack.c.bf16 %v644_v43, %v642_v41 }
 0x309   :  { %1078 = vrsqrt.f32 %v360_v45  ;;  %v641_v45 = vld [vmem:[#allocation7 + $0x100] sm:$0xff] }
 0x313   :  { %v1079_v46 = vpop.eup %1078 }
 0x314   :  { %v365_v47 = vrot.slane %v1079_v46, %v1348_v52  ;;  %v643_v46 = vld [vmem:[#allocation7 + $0x110] sm:$0xff] }
 0x316   :  { %v366_v49 = vmul.f32 %v365_v47, %v1351_v57  ;;  %v615_v57 = vld [vmem:[#allocation7 + $0x30] sm:$0xff]  ;;  %v1034_v47 = vpack.c.bf16 %v643_v46, %v641_v45 }
 0x317   :  { %v1006_v8 = vpack.c.bf16 %v615_v57, %v613_v5  ;;  %v658_v57 = vld [vmem:[#allocation7 + $0x188] sm:$0xff] }
 0x318   :  { %v367_v53 = vmul.f32 %v366_v49, %v91_v48  ;;  %v646_v48 = vld [vmem:[#allocation7 + $0x128] sm:$0xff]  ;;  %v648_v49 = vld [vmem:[#allocation7 + $0x138] sm:$0xff]  ;;  %v1048_v7 = vpack.c.bf16 %v660_v6, %v658_v57 }
 0x31a   :  { %v368_v54 = vadd.f32 %v367_v53, %v92_v50  ;;  %v1036_v50 = vpack.c.bf16 %v648_v49, %v646_v48  ;;  %v645_v53 = vld [vmem:[#allocation7 + $0x120] sm:$0xff] }
 0x31b   :  { %v96_v49 = vld [vmem:[#allocation9 + $0x4] ss:$8 sm:$0x3] }
 0x31c   :  { %v369_v55 = vsub.f32 0.0, %v368_v54  ;;  %v647_v54 = vld [vmem:[#allocation7 + $0x130] sm:$0xff] }
 0x31e   :  { %v370_v56 = vmul.f32 1.442695, %v369_v55  ;;  %v1038_v55 = vpack.c.bf16 %v647_v54, %v645_v53  ;;  %v681_v53 = vrot.slane %v96_v49, %v589_v28 }
 0x320   :  { %1080 = vpow2.f32 %v370_v56  ;;  %v650_v56 = vld [vmem:[#allocation7 + $0x148] sm:$0xff] }
 0x32a   :  { %v1081_v58 = vpop.eup %1080 }
 0x32b   :  { %v372_v59 = vadd.f32 1.0, %v1081_v58  ;;  %v652_v58 = vld [vmem:[#allocation7 + $0x158] sm:$0xff] }
 0x32d   :  { %1082 = vrcp.f32 %v372_v59  ;;  %v1040_v59 = vpack.c.bf16 %v652_v58, %v650_v56 }
 0x337   :  { %v1083_v1 = vpop.eup %1082 }
 0x338   :  { %v375_v3 = vmul.f32 %v1083_v1, %v1333_v42  ;;  %v621_v42 = vld [vmem:[#allocation7 + $0x60] sm:$0xff]  ;;  %v656_v1 = vld [vmem:[#allocation7 + $0x178] sm:$0xff] }
 0x339   :  { %v1014_v18 = vpack.c.bf16 %v623_v16, %v621_v42  ;;  %v666_v16 = vld [vmem:[#allocation7 + $0x1c8] sm:$0xff] }
 0x33a   :  { %505 = vmatmul.mubr.f32.vlgmr.msra.gmra.mrb[0].mxu1 %v375_v3  ;;  %576 = vmatmul.mubr.f32.vlgmr.msra.gmra.mrb[6].mxu0 %v375_v3  ;;  %v653_v3 = vld [vmem:[#allocation7 + $0x160] sm:$0xff]  ;;  %v1056_v0 = vpack.c.bf16 %v668_v17, %v666_v16 }
 0x33b   :  { %1003 = vmatpush1.bf16.msra.mxu1 %v1002_v2  ;;  %v1044_v2 = vpack.c.bf16 %v656_v1, %v654_v63 }
 0x33c   :  { %1005 = vmatprep.subr.bf16.mxu1 %v1004_v4  ;;  %v655_v4 = vld [vmem:[#allocation7 + $0x170] sm:$0xff] }
 0x33d   :  { %v1046_v5 = vpack.c.bf16 %v655_v4, %v653_v3 }
 0x33f   :  { %1007 = vmatpush1.bf16.msra.mxu1 %v1006_v8  ;;  %v657_v8 = vld [vmem:[#allocation7 + $0x180] sm:$0xff] }
 0x340   :  { %1009 = vmatprep.subr.bf16.mxu1 %v1008_v9  ;;  %v659_v9 = vld [vmem:[#allocation7 + $0x190] sm:$0xff] }
 0x341   :  { %v1050_v10 = vpack.c.bf16 %v659_v9, %v657_v8 }
 0x343   :  { %1011 = vmatpush1.bf16.msra.mxu1 %v1010_v14  ;;  %v661_v14 = vld [vmem:[#allocation7 + $0x1a0] sm:$0xff] }
 0x344   :  { %1013 = vmatprep.subr.bf16.mxu1 %v1012_v15  ;;  %v663_v15 = vld [vmem:[#allocation7 + $0x1b0] sm:$0xff] }
 0x345   :  { %v1054_v42 = vpack.c.bf16 %v663_v15, %v661_v14 }
 0x347   :  { %1015 = vmatpush1.bf16.msra.mxu1 %v1014_v18  ;;  %v665_v18 = vld [vmem:[#allocation7 + $0x1c0] sm:$0xff] }
 0x348   :  { %1017 = vmatprep.subr.bf16.mxu1 %v1016_v19  ;;  %v667_v19 = vld [vmem:[#allocation7 + $0x1d0] sm:$0xff] }
 0x349   :  { %v1058_v20 = vpack.c.bf16 %v667_v19, %v665_v18 }
 0x34b   :  { %1019 = vmatpush1.bf16.msra.mxu1 %v1018_v24  ;;  %v669_v24 = vld [vmem:[#allocation7 + $0x1e0] sm:$0xff] }
 0x34c   :  { %1021 = vmatprep.subr.bf16.mxu1 %v1020_v25  ;;  %v671_v25 = vld [vmem:[#allocation7 + $0x1f0] sm:$0xff] }
 0x34d   :  { %v1062_v26 = vpack.c.bf16 %v671_v25, %v669_v24 }
 0x34f   :  { %1023 = vmatpush1.bf16.msra.mxu1 %v1022_v30  ;;  %v590_v30 = vrot.slane %v94_v27, %v589_v28 }
 0x350   :  { %1025 = vmatprep.subr.bf16.mxu1 %v1024_v31 }
 0x353   :  { %1027 = vmatpush1.bf16.msra.mxu1 %v1026_v36 }
 0x354   :  { %1029 = vmatprep.subr.bf16.mxu1 %v1028_v37 }
 0x357   :  { %1031 = vmatpush1.bf16.msra.mxu1 %v1030_v40 }
 0x358   :  { %1033 = vmatprep.subr.bf16.mxu1 %v1032_v44 }
 0x35b   :  { %1035 = vmatpush1.bf16.msra.mxu1 %v1034_v47 }
 0x35c   :  { %1037 = vmatprep.subr.bf16.mxu1 %v1036_v50  ;;  %v677_v50 = vrot.slane %v96_v49, %v1348_v52 }
 0x35f   :  { %1039 = vmatpush1.bf16.msra.mxu1 %v1038_v55 }
 0x360   :  { %1041 = vmatprep.subr.bf16.mxu1 %v1040_v59 }
 0x363   :  { %1043 = vmatpush1.bf16.msra.mxu1 %v1042_v62 }
 0x364   :  { %1045 = vmatprep.subr.bf16.mxu1 %v1044_v2 }
 0x367   :  { %1047 = vmatpush1.bf16.msra.mxu1 %v1046_v5 }
 0x368   :  { %1049 = vmatprep.subr.bf16.mxu1 %v1048_v7 }
 0x36b   :  { %1051 = vmatpush1.bf16.msra.mxu1 %v1050_v10 }
 0x36c   :  { %1053 = vmatprep.subr.bf16.mxu1 %v1052_v13 }
 0x36f   :  { %1055 = vmatpush1.bf16.msra.mxu1 %v1054_v42 }
 0x370   :  { %1057 = vmatprep.subr.bf16.mxu1 %v1056_v0 }
 0x373   :  { %1059 = vmatpush1.bf16.msra.mxu1 %v1058_v20 }
 0x374   :  { %1061 = vmatprep.subr.bf16.mxu1 %v1060_v23 }
 0x377   :  { %1063 = vmatpush1.bf16.msra.mxu1 %v1062_v26 }
 0x40d   :  { %v506_v31 = vpop.f32.mrb[0].mxu1  ;;  %v577_v32 = vpop.f32.mrb[6].mxu0 }
 0x40e   :  { %v593_v33 = vadd.f32 %v586_v29, %v506_v31  ;;  %v508_v34 = vpop.f32.mrb[1].mxu1  ;;  %v579_v35 = vpop.f32.mrb[7].mxu0 }
 0x40f   :  { %v594_v36 = vadd.f32 %v590_v30, %v508_v34 }
 0x410   :  { %v595_v37 = vsub.f32 0.0, %v593_v33 }
 0x411   :  { %v596_v38 = vsub.f32 0.0, %v594_v36 }
 0x412   :  { %v597_v39 = vmul.f32 1.442695, %v595_v37 }
 0x413   :  { %v599_v40 = vmul.f32 1.442695, %v596_v38 }
 0x414   :  { %1084 = vpow2.f32 %v597_v39 }
 0x415   :  { %1086 = vpow2.f32 %v599_v40 }
 0x41e   :  { %v1085_v41 = vpop.eup %1084 }
 0x41f   :  { %v1087_v43 = vpop.eup %1086  ;;  %v601_v44 = vadd.f32 1.0, %v1085_v41 }
 0x420   :  { %v602_v45 = vadd.f32 1.0, %v1087_v43 }
 0x421   :  { %1088 = vrcp.f32 %v601_v44 }
 0x422   :  { %1090 = vrcp.f32 %v602_v45 }
 0x42b   :  { %v1089_v51 = vpop.eup %1088 }
 0x42c   :  { %v1091_v46 = vpop.eup %1090  ;;  %v607_v47 = vmul.f32 %v1089_v51, %v577_v32 }
 0x42d   :  { %v608_v48 = vmul.f32 %v1091_v46, %v579_v35 }
 0x42f   :  { %748 = vmatprep.mubr.f32.mxu1 %v608_v48 }
 0x430   :  { %749 = vmatmul.mubr.f32.vlgmr.msra.gmra.mrb[2].mxu1 %v607_v47 }
 0x503   :  { %v750_v54 = vpop.f32.mrb[2].mxu1 }
 0x504   :  { %v751_v55 = vadd.f32 %v750_v54, %v677_v50  ;;  %v752_v56 = vpop.f32.mrb[3].mxu1 }
 0x505   :  { %v753_v58 = vadd.f32 %v752_v56, %v681_v53 }
 0x507   :  { %v757_v59 = vcombine.low %v751_v55, %v753_v58 }
 0x509   :  { %775 = vst.sshfl [vmem:[%s1372_s6] sm:$0x33 pattern:$0x76325410] %v757_v59 }
 0x50a   :  { %771 = vsyncpa [#allocation3], 1 }
 0x50b   :  { %772 = vsyncpa [#allocation5], 1 }
 0x50c   :  { %773 = vsyncpa [#allocation8], 1 }

</bundles_post_ra>
